<compile_context>
chip_gen: v7x
topology: tpu7x:2x2x1
jax: 0.10.0
libtpu: 0.0.40
codegen_flags: <defaults>
</compile_context>

<pallas_src>
import functools

import jax
import jax.numpy as jnp
from jax.experimental import pallas as pl
from jax.experimental.pallas import tpu as pltpu

# Lane widths to try (widest first).  All multiples of 128 -> every vreg row /
# store is fully populated (unmasked vst), and the reshape is a free view when
# the width divides the element count.
_LANE_CANDIDATES = (1024, 512, 256, 128)
# Row-tile cap: 1024 rows x 1024 lanes x 4 B = 4 MiB f32 block; 16 MiB with
# in+out double buffering.
_TILE_R_CAP = 1024
# Scoped-VMEM limit: above v5e's 16 MiB default so the 16 MiB footprint fits,
# and below v7x's 64 MiB-per-TensorCore physical VMEM.
_VMEM_LIMIT_BYTES = 40 << 20
# Below this the fused XLA elementwise multiply beats a standalone kernel
# launch (streaming a few MiB is ~1 us at v6e/v7x HBM bandwidth; dispatch of a
# separate pallas_call is several us and blocks fusion with neighboring ops).
_MIN_PALLAS_BYTES = 4 << 20


def _round_up(n, m):
    return ((n + m - 1) // m) * m


def _scale_kernel(scale_ref, x_ref, o_ref, *, lr_mult):
    # scale_ref: SMEM (1,) f32 scalar.  x_ref / o_ref: VMEM (tile_r, lane) tiles.
    s = jnp.abs(scale_ref[0] * jnp.float32(lr_mult))   # loop-invariant f32 scalar
    x = x_ref[...]
    if jnp.dtype(x_ref.dtype) == jnp.dtype(jnp.float32):
        # f32 path: one VPU multiply per vreg, no converts.  Kernel stays purely
        # vld/vst (HBM DMA) bound.
        o_ref[...] = x * s
    else:
        # bf16/fp16 path: compute in f32, cast back.  The two converts per vreg
        # are hidden under the DMA-bound stream; f32 math matches PyTorch's
        # half*float promotion (modulo the final cast to x.dtype).
        o_ref[...] = (x.astype(jnp.float32) * s).astype(o_ref.dtype)


def scale_layer_init(init_value=1.0, lr_mult=1):
    """Matches nn.Parameter(torch.full((1,), init_value / lr_mult, dtype=float32))."""
    scale = jnp.full((1,), init_value / lr_mult, dtype=jnp.float32)
    return {"scale": scale, "lr_mult": lr_mult}


def _jnp_scale(scale, lr_mult, x):
    """Fused-XLA fallback (small or ragged tensors)."""
    s = jnp.abs(scale[0] * jnp.float32(lr_mult))
    return (x.astype(jnp.float32) * s).astype(x.dtype)


def scale_layer_forward(params, x, *, min_pallas_bytes=_MIN_PALLAS_BYTES,
                        donate_input=False):
    """y = x * abs(scale * lr_mult), elementwise."""
    scale = params["scale"]
    lr_mult = params["lr_mult"]

    n_elems = x.size
    if n_elems == 0 or n_elems * x.dtype.itemsize < min_pallas_bytes:
        # Small tensors: per-launch overhead dominates and XLA can fuse this
        # multiply into neighboring elementwise ops.
        return _jnp_scale(scale, lr_mult, x)

    # Widest lane width (multiple of 128) that divides n_elems -> the reshape
    # to (rows, lane) is a free view (no jnp.pad of the input and no output
    # slice, each of which would add a full extra HBM read + write).
    lane = next((l for l in _LANE_CANDIDATES if n_elems % l == 0), None)
    if lane is None:
        # Ragged element count: a padded kernel would move ~2x the bytes of the
        # (equally HBM-bound) fused XLA multiply, so just take the XLA path.
        return _jnp_scale(scale, lr_mult, x)

    rows = n_elems // lane
    x2d = x.reshape(rows, lane)

    # Row tiling: cap at _TILE_R_CAP; when the whole slab fits in one cap-sized
    # tile, split it into ~2 tiles (8-row aligned) so the grid has >= 2 steps
    # and both v7x TensorCores get work.  A tile equal to the full row extent
    # is always legal (e.g. rows < 8).
    if rows > _TILE_R_CAP:
        tile_r = _TILE_R_CAP
    else:
        tile_r = min(rows, max(8, _round_up(pl.cdiv(rows, 2), 8)))
    grid = (pl.cdiv(rows, tile_r),)

    kernel = functools.partial(_scale_kernel, lr_mult=float(lr_mult))

    out2d = pl.pallas_call(
        kernel,
        out_shape=jax.ShapeDtypeStruct((rows, lane), x.dtype),
        grid_spec=pltpu.PrefetchScalarGridSpec(
            num_scalar_prefetch=0,
            grid=grid,
            in_specs=[
                pl.BlockSpec(memory_space=pltpu.MemorySpace.SMEM),  # scale (1,) f32
                pl.BlockSpec((tile_r, lane), lambda i: (i, 0)),     # x tile
            ],
            out_specs=pl.BlockSpec((tile_r, lane), lambda i: (i, 0)),
        ),
        compiler_params=pltpu.CompilerParams(
            # Row tiles are independent -> shard across TensorCores on v7x.
            dimension_semantics=("parallel",),
            vmem_limit_bytes=_VMEM_LIMIT_BYTES,
        ),
        # Only alias x -> out when the caller guarantees x is dead afterwards;
        # otherwise XLA would insert a defensive copy (extra HBM traffic).
        input_output_aliases={1: 0} if donate_input else {},
    )(scale, x2d)

    return out2d.reshape(x.shape)


if __name__ == "__main__":
    # Small NCHW input, like the PyTorch module would receive: (2, 4, 16, 16).
    key = jax.random.PRNGKey(0)
    x = jax.random.normal(key, (2, 4, 16, 16), dtype=jnp.float32)
    params = scale_layer_init(init_value=1.0, lr_mult=1)

    # Force the Pallas path even though this tensor is below the size threshold
    # (normally it would take the cheap fused-XLA fallback).
    y = jax.block_until_ready(scale_layer_forward(params, x, min_pallas_bytes=0))
    expected = x * jnp.abs(params["scale"] * params["lr_mult"])
    assert y.shape == x.shape and y.dtype == x.dtype
    assert jnp.allclose(y, expected, atol=1e-6), "mismatch vs reference (small)"

    # Multi-block path with an edge block: 4*8*64*65 = 133120 elems
    # -> lane 1024, rows 130, tile 72 (8-aligned ~half), grid (2,).
    k1, k2 = jax.random.split(jax.random.PRNGKey(1))
    xb = jax.random.normal(k1, (4, 8, 64, 65), dtype=jnp.float32)
    params2 = scale_layer_init(init_value=0.05, lr_mult=10)
    yb = jax.block_until_ready(scale_layer_forward(params2, xb, min_pallas_bytes=0))
    expected_b = xb * jnp.abs(params2["scale"] * params2["lr_mult"])
    assert jnp.allclose(yb, expected_b, atol=1e-6), "mismatch vs reference (tiled)"

    # bf16 path (f32 compute in-kernel, cast back to bf16 output).
    xh = jax.random.normal(k2, (2, 4, 32, 32), dtype=jnp.bfloat16)
    yh = jax.block_until_ready(scale_layer_forward(params2, xh, min_pallas_bytes=0))
    s_h = jnp.abs(params2["scale"][0] * jnp.float32(params2["lr_mult"]))
    expected_h = (xh.astype(jnp.float32) * s_h).astype(jnp.bfloat16)
    assert yh.dtype == xh.dtype
    assert jnp.allclose(yh.astype(jnp.float32), expected_h.astype(jnp.float32),
                        atol=1e-2, rtol=1e-2), "mismatch vs reference (bf16)"

    # Ragged element count (3*5*7 = 105, not a multiple of 128) exercises the
    # fused-XLA fallback path (no pad/slice anywhere).
    xr = jax.random.normal(jax.random.PRNGKey(2), (3, 5, 7), dtype=jnp.float32)
    yr = jax.block_until_ready(scale_layer_forward(params, xr))
    expected_r = xr * jnp.abs(params["scale"] * params["lr_mult"])
    assert jnp.allclose(yr, expected_r, atol=1e-6), "mismatch vs reference (ragged)"

    print("KERNEL_OK")
</pallas_src>

<mosaic_0001>
module attributes {stable_mosaic.version = 11 : i64} {
  func.func @_scale_kernel(%arg0: i32, %arg1: memref<1xf32, #tpu.memory_space<smem>>, %arg2: memref<2x1024xf32, #tpu.memory_space<vmem>>, %arg3: memref<2x1024xf32, #tpu.memory_space<vmem>>) attributes {dimension_semantics = [#tpu.dimension_semantics<parallel>], iteration_bounds = array<i64: 1>, scalar_prefetch = 0 : i64, scratch_operands = 0 : i64, tpu.core_type = #tpu.core_type<tc>, window_params = [{transform_indices = @transform_0, window_bounds = array<i64: 1>}, {transform_indices = @transform_1, window_bounds = array<i64: 2, 1024>}, {transform_indices = @transform_2, window_bounds = array<i64: 2, 1024>}]} {
    %c0 = arith.constant 0 : index
    %0 = memref.load %arg1[%c0] : memref<1xf32, #tpu.memory_space<smem>>
    %cst = arith.constant 1.000000e+00 : f32
    %1 = arith.mulf %0, %cst : f32
    %2 = math.absf %1 : f32
    %c0_0 = arith.constant 0 : index
    %c0_1 = arith.constant 0 : index
    %3 = vector.load %arg2[%c0_0, %c0_1] : memref<2x1024xf32, #tpu.memory_space<vmem>>, vector<2x1024xf32>
    %4 = vector.broadcast %2 : f32 to vector<2x1024xf32>
    %5 = arith.mulf %3, %4 : vector<2x1024xf32>
    %c0_2 = arith.constant 0 : index
    %c0_3 = arith.constant 0 : index
    %6 = vector.load %arg3[%c0_2, %c0_3] : memref<2x1024xf32, #tpu.memory_space<vmem>>, vector<2x1024xf32>
    tpu.vector_store %arg3[%c0_2, %c0_3], %5 {strides = array<i32>} : memref<2x1024xf32, #tpu.memory_space<vmem>>, vector<2x1024xf32>,
    return
  }
  func.func @transform_0(%arg0: i32) -> i32 {
    %c0_i32 = arith.constant 0 : i32
    %c0_i32_0 = arith.constant 0 : i32
    return %c0_i32 : i32
  }
  func.func @transform_1(%arg0: i32) -> (i32, i32) {
    %c0_i32 = arith.constant 0 : i32
    %c0_i32_0 = arith.constant 0 : i32
    return %arg0, %c0_i32 : i32, i32
  }
  func.func @transform_2(%arg0: i32) -> (i32, i32) {
    %c0_i32 = arith.constant 0 : i32
    %c0_i32_0 = arith.constant 0 : i32
    return %arg0, %c0_i32 : i32, i32
  }
}

</mosaic_0001>

<bundles_post_ra>
// kernel: tpu_custom_call.1
= control target key start
LH: loop header
LB: loop body
LE: loop exit
PB: predicated region body
PF: predicated region fallthrough
CT: control target
= control target key end

     0   :  { %8 = vsyncpa [#allocation4], 0  ;;  %s143_s0 = inlined_call_operand.<no memory space> [shape: f32[1], index: 0, kind: input, shape index: {}]   ;;  %s144_s1 = inlined_call_operand.hbm [shape: f32[2,1024], index: 1, kind: input, shape index: {}]   ;;  %s145_s2 = inlined_call_operand.hbm [shape: f32[2,1024], index: 2, kind: output, shape index: {}]  }
   0x1   :  { %9 = vsyncpa [#allocation5], 0  ;;  %s99_s9 = smov [#allocation3]   ;;  %s51_s13 = scalar_lea.hbm %s144_s1, 256 }
   0x2   :  { %s18_s10 = sshll.u32 %s99_s9, 4  ;;  %p52_p0 = scmp.ne.s32.totalorder %s144_s1, %s51_s13  ;;  %s19_s10 = int_to_ptr.vmem [resolvable:$true] %s18_s10 }
   0x3   :  { %p55_p1 = scmp.lt.u32.totalorder %s51_s13, %s144_s1 }
   0x5   :  { %p57_p2 = pnand %p55_p1, %p52_p0 }
   0x7   :  { %60 = shalt.err (!%p57_p2)
}
   0x8   :  { %s61_s18 = scalar_lea.vmem %s19_s10, 256  ;;  %p66_p4 = scmp.lt.s32.totalorder %s19_s10, %s19_s10 }
   0x9   :  { %p62_p3 = scmp.ne.s32.totalorder %s19_s10, %s61_s18  ;;  %p67_p5 = scmp.lt.s32.totalorder %s61_s18, %s61_s18 }
   0xb   :  { %p68_p6 = por %p67_p5, %p66_p4 }
   0xd   :  { %p69_p7 = pnand %p68_p6, %p62_p3 }
   0xf   :  { %72 = shalt.err (!%p69_p7)
}
  0x10   :  { %21 = dma.hbm_to_vmem [thread:$0]  %s144_s1, 256, %s19_s10, [#allocation4]  }
  0x11   :  { %95 = dma.done.wait [#allocation4], 256  }
  0x12   :  { %96 = vsyncadd [#allocation4], 4294967040  ;;  %s26_s23 = sand.u32 2147483647, %s143_s0  ;;  %s100_s24 = smov [#allocation6]   ;;  %v27_v1 = vld [vmem:[#allocation3] sm:$0xff] }
  0x13   :  { %v29_v0 = vstv %s26_s23  ;;  %s40_s25 = sshll.u32 %s100_s24, 4  ;;  %v28_v2 = vld [vmem:[#allocation3 + $0x8] sm:$0xff]  ;;  %s41_s25 = int_to_ptr.vmem [resolvable:$true] %s40_s25 }
  0x14   :  { %v30_v3 = vmul.f32 %v29_v0, %v27_v1  ;;  %v31_v4 = vmul.f32 %v29_v0, %v28_v2  ;;  %s73_s26 = scalar_lea.vmem %s41_s25, 256  ;;  %p78_p9 = scmp.lt.s32.totalorder %s41_s25, %s41_s25 }
  0x15   :  { %p74_p8 = scmp.ne.s32.totalorder %s41_s25, %s73_s26  ;;  %p79_p10 = scmp.lt.s32.totalorder %s73_s26, %s73_s26 }
  0x16   :  { %32 = vst [vmem:[#allocation6] sm:$0xff] %v30_v3  ;;  %33 = vst [vmem:[#allocation6 + $0x8] sm:$0xff] %v31_v4 }
  0x17   :  { %p80_p11 = por %p79_p10, %p78_p9 }
  0x19   :  { %p81_p12 = pnand %p80_p11, %p74_p8 }
  0x1b   :  { %84 = shalt.err (!%p81_p12)
}
  0x1c   :  { %s85_s0 = scalar_lea.hbm %s145_s2, 256 }
  0x1d   :  { %p86_p13 = scmp.ne.s32.totalorder %s145_s2, %s85_s0  ;;  %p89_p0 = scmp.lt.u32.totalorder %s85_s0, %s145_s2 }
  0x1f   :  { %p91_p1 = pnand %p89_p0, %p86_p13 }
  0x21   :  { %94 = shalt.err (!%p91_p1)
}
  0x22   :  { %43 = dma.vmem_to_hbm [thread:$0]  %s41_s25, 256, %s145_s2, [#allocation5]  }
  0x23   :  { %97 = dma.done.wait [#allocation5], 256  }
  0x24   :  { %98 = vsyncadd [#allocation5], 4294967040 }
  0x25   :  { %47 = vsyncpa [#allocation4], 1 }
  0x26   :  { %48 = vsyncpa [#allocation5], 1 }

</bundles_post_ra>
